<compile_context>
chip_gen: v7x
topology: tpu7x:2x2x1
jax: 0.10.0
libtpu: 0.0.40
codegen_flags: <defaults>
</compile_context>

<pallas_src>
import numpy as np
import jax
import jax.numpy as jnp
from jax import lax
from jax.experimental import pallas as pl
from jax.experimental.pallas import tpu as pltpu


# Dtype fed to the MXU.  Kept f32 here so the 1e-4 reference check passes; set to
# jnp.bfloat16 on v6e/v7x for ~2x (accumulation stays f32 via preferred_element_type).
_MXU_DTYPE = jnp.float32
_VMEM_LIMIT = 32 * 1024 * 1024  # explicit scoped-VMEM budget, safe on v5e/v6e/v7x


def _mx(x):
    return x.astype(_MXU_DTYPE)


def _dot(a, b):
    return jnp.dot(_mx(a), _mx(b), preferred_element_type=jnp.float32)


def _row_tile(h):
    # Largest row tile <= 8 that divides H.  Demo sizes are tiny; for production FPN
    # resolutions sweep much larger tiles (target a few MiB per buffer) against the
    # per-generation VMEM budget (v7x: 64 MiB physical).
    for t in (8, 4, 2, 1):
        if h % t == 0:
            return t
    return 1


# ------------------------------------------------------------------ kernels

def _conv3x3_from_pad(pad_ref, w3dx_ref, b3_ref, th, w, cout):
    """3x3 conv on a zero-padded inner tile held in VMEM scratch.

    pad_ref: (tH+2, W+2, Cout).  The 3 dy taps are contiguous row slices
    concatenated on the lane axis -> 3 fat K=3*Cout contractions sharing one LHS;
    only the 3 dx shifts slice the (W+2)-wide results (no 9 strided input copies).
    """
    r0 = pad_ref[0:th].reshape(th * (w + 2), cout)
    r1 = pad_ref[1:th + 1].reshape(th * (w + 2), cout)
    r2 = pad_ref[2:th + 2].reshape(th * (w + 2), cout)
    rows_cat = jnp.concatenate([r0, r1, r2], axis=-1)            # (tH*(W+2), 3*Cout)
    a0 = _dot(rows_cat, w3dx_ref[0]).reshape(th, w + 2, cout)
    a1 = _dot(rows_cat, w3dx_ref[1]).reshape(th, w + 2, cout)
    a2 = _dot(rows_cat, w3dx_ref[2]).reshape(th, w + 2, cout)
    return a0[:, 0:w, :] + a1[:, 1:w + 1, :] + a2[:, 2:w + 2, :] + b3_ref[...]


def _top_level_kernel(x_ref, xt_ref, xb_ref, w1_ref, b1_ref, w3dx_ref, b3_ref,
                      o_ref, pad_ref):
    # Fused conv1x1 -> conv3x3 for the top (smallest) pyramid level, row-tiled.
    t = pl.program_id(1)
    nt = pl.num_programs(1)
    _, th, w, cout = o_ref.shape
    cin = x_ref.shape[-1]

    # 1x1 over this row tile (M-tiled matmul).
    inner = _dot(x_ref[0].reshape(th * w, cin), w1_ref[...]) + b1_ref[...]

    # Recompute the 1x1 on the two halo rows; mask to exact zero at image borders so
    # the 3x3 sees true zero padding (not bias).
    top_valid = jnp.where(t > 0, 1.0, 0.0)
    bot_valid = jnp.where(t < nt - 1, 1.0, 0.0)
    top_row = (_dot(xt_ref[0, 0], w1_ref[...]) + b1_ref[...]) * top_valid
    bot_row = (_dot(xb_ref[0, 0], w1_ref[...]) + b1_ref[...]) * bot_valid

    pad_ref[...] = jnp.zeros_like(pad_ref)
    pad_ref[0, 1:w + 1, :] = top_row
    pad_ref[th + 1, 1:w + 1, :] = bot_row
    pad_ref[1:th + 1, 1:w + 1, :] = inner.reshape(th, w, cout)

    o_ref[0] = _conv3x3_from_pad(pad_ref, w3dx_ref, b3_ref, th, w, cout)


def _lateral_level_kernel(up_ref, upt_ref, upb_ref, ft_ref, ftt_ref, ftb_ref,
                          wu_ref, wl_ref, b1_ref, w3dx_ref, b3_ref,
                          inner_ref, o_ref, pad_ref):
    # Fused [channel-concat -> conv1x1 -> conv3x3] for one lateral level, row-tiled.
    t = pl.program_id(1)
    nt = pl.num_programs(1)
    _, th, w, cout = o_ref.shape
    cup = up_ref.shape[-1]
    cft = ft_ref.shape[-1]

    # concat fused as two dots into one accumulator (no HBM concat tensor).
    inner = (_dot(up_ref[0].reshape(th * w, cup), wu_ref[...])
             + _dot(ft_ref[0].reshape(th * w, cft), wl_ref[...])
             + b1_ref[...])
    inner_ref[0] = inner.reshape(th, w, cout)

    top_valid = jnp.where(t > 0, 1.0, 0.0)
    bot_valid = jnp.where(t < nt - 1, 1.0, 0.0)
    top_row = (_dot(upt_ref[0, 0], wu_ref[...]) + _dot(ftt_ref[0, 0], wl_ref[...])
               + b1_ref[...]) * top_valid
    bot_row = (_dot(upb_ref[0, 0], wu_ref[...]) + _dot(ftb_ref[0, 0], wl_ref[...])
               + b1_ref[...]) * bot_valid

    pad_ref[...] = jnp.zeros_like(pad_ref)
    pad_ref[0, 1:w + 1, :] = top_row
    pad_ref[th + 1, 1:w + 1, :] = bot_row
    pad_ref[1:th + 1, 1:w + 1, :] = inner.reshape(th, w, cout)

    o_ref[0] = _conv3x3_from_pad(pad_ref, w3dx_ref, b3_ref, th, w, cout)


def _resize_kernel(x_ref, rh_ref, rw_ref, o_ref):
    # Bilinear (align_corners=False) resize, channels kept on the lane axis.
    _, hin, win, c = x_ref.shape
    _, hout, wout, _ = o_ref.shape
    # H direction: one lane-dense 2D matmul.
    xf = x_ref[0].reshape(hin, win * c)
    tmp = _dot(rh_ref[...], xf).reshape(hout, win, c)
    # W direction: batched matmul over output rows; output stays (Hout, Wout, C).
    rwb = jnp.broadcast_to(rw_ref[...], (hout, wout, win))
    out = jnp.einsum("bjq,bqc->bjc", _mx(rwb), _mx(tmp),
                     preferred_element_type=jnp.float32)
    o_ref[0] = out


# ------------------------------------------------------------------ wrappers

def _pack_w3(w3):
    # (3, 3, C, Cout) HWIO -> (dx, 3*C, Cout): dy taps stacked along K so the 3x3
    # becomes three fat MXU contractions sharing one LHS.
    return jnp.stack(
        [jnp.concatenate([w3[dy, dx] for dy in range(3)], axis=0) for dx in range(3)],
        axis=0)


def fused_top_level(x, w1, b1, w3, b3):
    """x: (N, H, W, Cin) NHWC -> conv3x3(conv1x1(x)), fused, row-tiled."""
    n, h, w, cin = x.shape
    cout = w1.shape[1]
    th = _row_tile(h)
    nt = h // th
    w3dx = _pack_w3(w3)
    b1r = b1.reshape(1, cout)
    b3r = b3.reshape(1, cout)

    main = pl.BlockSpec((1, th, w, cin), lambda i, t: (i, t, 0, 0))
    halo_top = pl.BlockSpec((1, 1, w, cin),
                            lambda i, t: (i, jnp.maximum(t * th - 1, 0), 0, 0))
    halo_bot = pl.BlockSpec((1, 1, w, cin),
                            lambda i, t: (i, jnp.minimum(t * th + th, h - 1), 0, 0))

    return pl.pallas_call(
        _top_level_kernel,
        out_shape=jax.ShapeDtypeStruct((n, h, w, cout), jnp.float32),
        grid=(n, nt),
        in_specs=[
            main, halo_top, halo_bot,
            pl.BlockSpec((cin, cout), lambda i, t: (0, 0)),
            pl.BlockSpec((1, cout), lambda i, t: (0, 0)),
            pl.BlockSpec((3, 3 * cout, cout), lambda i, t: (0, 0, 0)),
            pl.BlockSpec((1, cout), lambda i, t: (0, 0)),
        ],
        out_specs=pl.BlockSpec((1, th, w, cout), lambda i, t: (i, t, 0, 0)),
        scratch_shapes=[pltpu.VMEM((th + 2, w + 2, cout), jnp.float32)],
        compiler_params=pltpu.CompilerParams(
            dimension_semantics=("parallel", "parallel"),
            vmem_limit_bytes=_VMEM_LIMIT),
    )(x, x, x, w1, b1r, w3dx, b3r)


def fused_lateral_level(up, feat, w_up, w_lat, b1, w3, b3):
    """up/feat: (N, H, W, *) NHWC.  Returns (inner, conv3x3(inner)) with the channel
    concat and the 1x1->3x3 chain fused into one pallas_call (row-tiled)."""
    n, h, w, cup = up.shape
    cft = feat.shape[-1]
    cout = w_up.shape[1]
    th = _row_tile(h)
    nt = h // th
    w3dx = _pack_w3(w3)
    b1r = b1.reshape(1, cout)
    b3r = b3.reshape(1, cout)

    def main(c):
        return pl.BlockSpec((1, th, w, c), lambda i, t: (i, t, 0, 0))

    def halo_top(c):
        return pl.BlockSpec((1, 1, w, c),
                            lambda i, t: (i, jnp.maximum(t * th - 1, 0), 0, 0))

    def halo_bot(c):
        return pl.BlockSpec((1, 1, w, c),
                            lambda i, t: (i, jnp.minimum(t * th + th, h - 1), 0, 0))

    out_spec = pl.BlockSpec((1, th, w, cout), lambda i, t: (i, t, 0, 0))

    inner, out3 = pl.pallas_call(
        _lateral_level_kernel,
        out_shape=(jax.ShapeDtypeStruct((n, h, w, cout), jnp.float32),
                   jax.ShapeDtypeStruct((n, h, w, cout), jnp.float32)),
        grid=(n, nt),
        in_specs=[
            main(cup), halo_top(cup), halo_bot(cup),
            main(cft), halo_top(cft), halo_bot(cft),
            pl.BlockSpec((cup, cout), lambda i, t: (0, 0)),
            pl.BlockSpec((cft, cout), lambda i, t: (0, 0)),
            pl.BlockSpec((1, cout), lambda i, t: (0, 0)),
            pl.BlockSpec((3, 3 * cout, cout), lambda i, t: (0, 0, 0)),
            pl.BlockSpec((1, cout), lambda i, t: (0, 0)),
        ],
        out_specs=(out_spec, out_spec),
        scratch_shapes=[pltpu.VMEM((th + 2, w + 2, cout), jnp.float32)],
        compiler_params=pltpu.CompilerParams(
            dimension_semantics=("parallel", "parallel"),
            vmem_limit_bytes=_VMEM_LIMIT),
    )(up, up, up, feat, feat, feat, w_up, w_lat, b1r, w3dx, b3r)
    return inner, out3


def bilinear_matrix(out_size, in_size):
    # Exactly reproduces F.interpolate(mode='bilinear', align_corners=False).
    i = np.arange(out_size, dtype=np.float64)
    scale = in_size / out_size
    src = np.maximum(scale * (i + 0.5) - 0.5, 0.0)
    i0 = np.minimum(np.floor(src).astype(np.int64), in_size - 1)
    i1 = np.minimum(i0 + 1, in_size - 1)
    w1 = src - i0
    w0 = 1.0 - w1
    mat = np.zeros((out_size, in_size), np.float32)
    mat[np.arange(out_size), i0] += w0.astype(np.float32)
    mat[np.arange(out_size), i1] += w1.astype(np.float32)
    return mat


def bilinear_resize(x, out_hw):
    # x: (N, H, W, C) NHWC -> (N, Hout, Wout, C); no transposes, grid=(N,).
    n, hin, win, c = x.shape
    hout, wout = out_hw
    rh = jnp.asarray(bilinear_matrix(hout, hin))
    rw = jnp.asarray(bilinear_matrix(wout, win))
    return pl.pallas_call(
        _resize_kernel,
        out_shape=jax.ShapeDtypeStruct((n, hout, wout, c), jnp.float32),
        grid=(n,),
        in_specs=[
            pl.BlockSpec((1, hin, win, c), lambda i: (i, 0, 0, 0)),
            pl.BlockSpec((hout, hin), lambda i: (0, 0)),
            pl.BlockSpec((wout, win), lambda i: (0, 0)),
        ],
        out_specs=pl.BlockSpec((1, hout, wout, c), lambda i: (i, 0, 0, 0)),
        compiler_params=pltpu.CompilerParams(
            dimension_semantics=("parallel",),
            vmem_limit_bytes=_VMEM_LIMIT),
    )(x, rh, rw)


# ------------------------------------------------------------------ FPNCAT forward

def init_params(key, in_channels_list, out_channels):
    params = {}
    for idx, cin in enumerate(in_channels_list, 1):
        key, k1, k2, k3, k4 = jax.random.split(key, 5)
        params[f"inner{idx}_w"] = (
            jax.random.normal(k1, (cin, out_channels), jnp.float32)
            / np.sqrt(cin).astype(np.float32))
        params[f"inner{idx}_b"] = 0.01 * jax.random.normal(k2, (out_channels,), jnp.float32)
        params[f"layer{idx}_w"] = (
            jax.random.normal(k3, (3, 3, out_channels, out_channels), jnp.float32)
            / np.sqrt(9 * out_channels).astype(np.float32))
        params[f"layer{idx}_b"] = 0.01 * jax.random.normal(k4, (out_channels,), jnp.float32)
    return params


def fpn_cat_forward(params, x_list):
    """x_list: list of NCHW feature maps, increasing depth (decreasing resolution).
    Returns tuple of NCHW outputs, highest resolution first (like the PyTorch module)."""
    # NCHW<->NHWC transposes hoisted to the pyramid boundary only.
    feats = [jnp.transpose(x, (0, 2, 3, 1)) for x in x_list]
    n = len(feats)
    results = [None] * n

    results[n - 1] = fused_top_level(
        feats[-1], params[f"inner{n}_w"], params[f"inner{n}_b"],
        params[f"layer{n}_w"], params[f"layer{n}_b"])

    prev = feats[-1]  # NOTE: FPNCAT resets last_inner to the raw top feature
    for idx in range(n - 1, 0, -1):
        feature = feats[idx - 1]
        up = bilinear_resize(prev, (feature.shape[1], feature.shape[2]))
        c_up = up.shape[-1]
        w = params[f"inner{idx}_w"]           # (c_up + c_feat, out): split = fused concat
        inner, out3 = fused_lateral_level(
            up, feature, w[:c_up], w[c_up:], params[f"inner{idx}_b"],
            params[f"layer{idx}_w"], params[f"layer{idx}_b"])
        results[idx - 1] = out3
        prev = inner

    # TODO(synk): top_blocks is None in this synthetic configuration (LastLevelMaxPool
    # would be one extra small kernel appended here).
    return tuple(jnp.transpose(r, (0, 3, 1, 2)) for r in results)


# ------------------------------------------------------------------ plain-JAX reference

def ref_forward(params, x_list):
    hp = jax.lax.Precision.HIGHEST

    def c1(x, w, b):
        return jnp.einsum("nhwc,cd->nhwd", x, w, precision=hp) + b

    def c3(x, w, b):
        return lax.conv_general_dilated(
            x, w, window_strides=(1, 1), padding="SAME",
            dimension_numbers=("NHWC", "HWIO", "NHWC"), precision=hp) + b

    def rs(x, out_hw):
        rh = jnp.asarray(bilinear_matrix(out_hw[0], x.shape[1]))
        rw = jnp.asarray(bilinear_matrix(out_hw[1], x.shape[2]))
        return jnp.einsum("ip,jq,npqc->nijc", rh, rw, x, precision=hp)

    feats = [jnp.transpose(x, (0, 2, 3, 1)) for x in x_list]
    n = len(feats)
    last_inner = c1(feats[-1], params[f"inner{n}_w"], params[f"inner{n}_b"])
    results = [c3(last_inner, params[f"layer{n}_w"], params[f"layer{n}_b"])]
    last_inner = feats[-1]
    for idx in range(n - 1, 0, -1):
        feature = feats[idx - 1]
        last_inner = rs(last_inner, (feature.shape[1], feature.shape[2]))
        inner_lateral = jnp.concatenate([last_inner, feature], axis=-1)
        last_inner = c1(inner_lateral, params[f"inner{idx}_w"], params[f"inner{idx}_b"])
        results.insert(0, c3(last_inner, params[f"layer{idx}_w"], params[f"layer{idx}_b"]))
    return tuple(jnp.transpose(r, (0, 3, 1, 2)) for r in results)


# ------------------------------------------------------------------ main

if __name__ == "__main__":
    N = 2
    out_channels = 8
    feat_channels = [4, 8, 8]                 # raw channels of x[0], x[1], x[2]
    feat_sizes = [(16, 16), (8, 8), (4, 4)]   # decreasing resolution

    # in_channels_list must match FPNCAT's concat semantics:
    #   inner3 sees x[2]; inner2 sees cat(x[2]_up, x[1]); inner1 sees cat(out_ch_up, x[0])
    in_channels_list = [
        out_channels + feat_channels[0],
        feat_channels[2] + feat_channels[1],
        feat_channels[2],
    ]

    key = jax.random.PRNGKey(0)
    key, *fkeys = jax.random.split(key, 1 + len(feat_channels))
    x_nchw = [
        jax.random.normal(fk, (N, c, h, w), jnp.float32)
        for fk, c, (h, w) in zip(fkeys, feat_channels, feat_sizes)
    ]
    params = init_params(jax.random.PRNGKey(1), in_channels_list, out_channels)

    outs = fpn_cat_forward(params, x_nchw)
    outs = jax.block_until_ready(outs)

    refs = ref_forward(params, x_nchw)
    for o, r in zip(outs, refs):
        assert o.shape == r.shape, (o.shape, r.shape)
        err = float(jnp.max(jnp.abs(o - r)))
        assert jnp.allclose(o, r, atol=2e-4, rtol=2e-4), f"max abs err {err}"

    print("KERNEL_OK")
</pallas_src>

<mosaic_0001>
module attributes {stable_mosaic.version = 11 : i64} {
  func.func @_top_level_kernel(%arg0: i32, %arg1: i32, %arg2: memref<1x4x4x8xf32, #tpu.memory_space<vmem>>, %arg3: memref<1x1x4x8xf32, #tpu.memory_space<vmem>>, %arg4: memref<1x1x4x8xf32, #tpu.memory_space<vmem>>, %arg5: memref<8x8xf32, #tpu.memory_space<vmem>>, %arg6: memref<1x8xf32, #tpu.memory_space<vmem>>, %arg7: memref<3x24x8xf32, #tpu.memory_space<vmem>>, %arg8: memref<1x8xf32, #tpu.memory_space<vmem>>, %arg9: memref<1x4x4x8xf32, #tpu.memory_space<vmem>>, %arg10: memref<6x6x8xf32, #tpu.memory_space<vmem>>) attributes {dimension_semantics = [#tpu.dimension_semantics<parallel>, #tpu.dimension_semantics<parallel>], iteration_bounds = array<i64: 2, 1>, scalar_prefetch = 0 : i64, scratch_operands = 1 : i64, tpu.core_type = #tpu.core_type<tc>, window_params = [{transform_indices = @transform_0, window_bounds = array<i64: 1, 4, 4, 8>}, {transform_indices = @transform_1, window_bounds = array<i64: 1, 1, 4, 8>}, {transform_indices = @transform_2, window_bounds = array<i64: 1, 1, 4, 8>}, {pipeline_mode = #tpu.pipeline_mode<synchronous>, transform_indices = @transform_3, window_bounds = array<i64: 8, 8>}, {pipeline_mode = #tpu.pipeline_mode<synchronous>, transform_indices = @transform_4, window_bounds = array<i64: 1, 8>}, {pipeline_mode = #tpu.pipeline_mode<synchronous>, transform_indices = @transform_5, window_bounds = array<i64: 3, 24, 8>}, {pipeline_mode = #tpu.pipeline_mode<synchronous>, transform_indices = @transform_6, window_bounds = array<i64: 1, 8>}, {transform_indices = @transform_7, window_bounds = array<i64: 1, 4, 4, 8>}]} {
    %c0 = arith.constant 0 : index
    %c0_0 = arith.constant 0 : index
    %c0_1 = arith.constant 0 : index
    %c0_2 = arith.constant 0 : index
    %0 = vector.load %arg2[%c0, %c0_0, %c0_1, %c0_2] : memref<1x4x4x8xf32, #tpu.memory_space<vmem>>, vector<1x4x4x8xf32>
    %1 = vector.shape_cast %0 : vector<1x4x4x8xf32> to vector<4x4x8xf32>
    %2 = vector.shape_cast %1 : vector<4x4x8xf32> to vector<16x8xf32>
    %c0_3 = arith.constant 0 : index
    %c0_4 = arith.constant 0 : index
    %3 = vector.load %arg5[%c0_3, %c0_4] : memref<8x8xf32, #tpu.memory_space<vmem>>, vector<8x8xf32>
    %cst = arith.constant dense<0.000000e+00> : vector<16x8xf32>
    %4 = tpu.matmul %2, %3, %cst {dimension_numbers = #tpu.dot_dimension_numbers<[1], [0], [0], [1], [0, 0, 1, 1], [], []>} : vector<16x8xf32>, vector<8x8xf32>, vector<16x8xf32> -> vector<16x8xf32>
    %c0_5 = arith.constant 0 : index
    %c0_6 = arith.constant 0 : index
    %5 = vector.load %arg6[%c0_5, %c0_6] : memref<1x8xf32, #tpu.memory_space<vmem>>, vector<1x8xf32>
    %6 = vector.broadcast %5 : vector<1x8xf32> to vector<16x8xf32>
    %7 = arith.addf %4, %6 : vector<16x8xf32>
    %c0_i32 = arith.constant 0 : i32
    %8 = arith.cmpi sgt, %arg1, %c0_i32 : i32
    %cst_7 = arith.constant 1.000000e+00 : f32
    %cst_8 = arith.constant 0.000000e+00 : f32
    %9 = arith.select %8, %cst_7, %cst_8 : f32
    %c0_i32_9 = arith.constant 0 : i32
    %10 = arith.cmpi slt, %arg1, %c0_i32_9 : i32
    %cst_10 = arith.constant 1.000000e+00 : f32
    %cst_11 = arith.constant 0.000000e+00 : f32
    %11 = arith.select %10, %cst_10, %cst_11 : f32
    %c0_12 = arith.constant 0 : index
    %c0_13 = arith.constant 0 : index
    %c0_14 = arith.constant 0 : index
    %c0_15 = arith.constant 0 : index
    %12 = vector.load %arg3[%c0_12, %c0_13, %c0_14, %c0_15] : memref<1x1x4x8xf32, #tpu.memory_space<vmem>>, vector<1x1x4x8xf32>
    %13 = vector.shape_cast %12 : vector<1x1x4x8xf32> to vector<4x8xf32>
    %c0_16 = arith.constant 0 : index
    %c0_17 = arith.constant 0 : index
    %14 = vector.load %arg5[%c0_16, %c0_17] : memref<8x8xf32, #tpu.memory_space<vmem>>, vector<8x8xf32>
    %cst_18 = arith.constant dense<0.000000e+00> : vector<4x8xf32>
    %15 = tpu.matmul %13, %14, %cst_18 {dimension_numbers = #tpu.dot_dimension_numbers<[1], [0], [0], [1], [0, 0, 1, 1], [], []>} : vector<4x8xf32>, vector<8x8xf32>, vector<4x8xf32> -> vector<4x8xf32>
    %c0_19 = arith.constant 0 : index
    %c0_20 = arith.constant 0 : index
    %16 = vector.load %arg6[%c0_19, %c0_20] : memref<1x8xf32, #tpu.memory_space<vmem>>, vector<1x8xf32>
    %17 = vector.broadcast %16 : vector<1x8xf32> to vector<4x8xf32>
    %18 = arith.addf %15, %17 : vector<4x8xf32>
    %19 = vector.broadcast %9 : f32 to vector<4x8xf32>
    %20 = arith.mulf %18, %19 : vector<4x8xf32>
    %c0_21 = arith.constant 0 : index
    %c0_22 = arith.constant 0 : index
    %c0_23 = arith.constant 0 : index
    %c0_24 = arith.constant 0 : index
    %21 = vector.load %arg4[%c0_21, %c0_22, %c0_23, %c0_24] : memref<1x1x4x8xf32, #tpu.memory_space<vmem>>, vector<1x1x4x8xf32>
    %22 = vector.shape_cast %21 : vector<1x1x4x8xf32> to vector<4x8xf32>
    %c0_25 = arith.constant 0 : index
    %c0_26 = arith.constant 0 : index
    %23 = vector.load %arg5[%c0_25, %c0_26] : memref<8x8xf32, #tpu.memory_space<vmem>>, vector<8x8xf32>
    %cst_27 = arith.constant dense<0.000000e+00> : vector<4x8xf32>
    %24 = tpu.matmul %22, %23, %cst_27 {dimension_numbers = #tpu.dot_dimension_numbers<[1], [0], [0], [1], [0, 0, 1, 1], [], []>} : vector<4x8xf32>, vector<8x8xf32>, vector<4x8xf32> -> vector<4x8xf32>
    %c0_28 = arith.constant 0 : index
    %c0_29 = arith.constant 0 : index
    %25 = vector.load %arg6[%c0_28, %c0_29] : memref<1x8xf32, #tpu.memory_space<vmem>>, vector<1x8xf32>
    %26 = vector.broadcast %25 : vector<1x8xf32> to vector<4x8xf32>
    %27 = arith.addf %24, %26 : vector<4x8xf32>
    %28 = vector.broadcast %11 : f32 to vector<4x8xf32>
    %29 = arith.mulf %27, %28 : vector<4x8xf32>
    %cst_30 = arith.constant 0.000000e+00 : f32
    %30 = vector.broadcast %cst_30 : f32 to vector<6x6x8xf32>
    %c0_31 = arith.constant 0 : index
    %c0_32 = arith.constant 0 : index
    %c0_33 = arith.constant 0 : index
    %31 = vector.load %arg10[%c0_31, %c0_32, %c0_33] : memref<6x6x8xf32, #tpu.memory_space<vmem>>, vector<6x6x8xf32>
    tpu.vector_store %arg10[%c0_31, %c0_32, %c0_33], %30 {strides = array<i32>} : memref<6x6x8xf32, #tpu.memory_space<vmem>>, vector<6x6x8xf32>,
    %c0_34 = arith.constant 0 : index
    %c1 = arith.constant 1 : index
    %c0_35 = arith.constant 0 : index
    %32 = vector.load %arg10[%c0_34, %c1, %c0_35] : memref<6x6x8xf32, #tpu.memory_space<vmem>>, vector<1x4x8xf32>
    %33 = vector.shape_cast %32 : vector<1x4x8xf32> to vector<4x8xf32>
    %34 = vector.shape_cast %20 : vector<4x8xf32> to vector<1x4x8xf32>
    tpu.vector_store %arg10[%c0_34, %c1, %c0_35], %34 {strides = array<i32>} : memref<6x6x8xf32, #tpu.memory_space<vmem>>, vector<1x4x8xf32>,
    %c5 = arith.constant 5 : index
    %c1_36 = arith.constant 1 : index
    %c0_37 = arith.constant 0 : index
    %35 = vector.load %arg10[%c5, %c1_36, %c0_37] : memref<6x6x8xf32, #tpu.memory_space<vmem>>, vector<1x4x8xf32>
    %36 = vector.shape_cast %35 : vector<1x4x8xf32> to vector<4x8xf32>
    %37 = vector.shape_cast %29 : vector<4x8xf32> to vector<1x4x8xf32>
    tpu.vector_store %arg10[%c5, %c1_36, %c0_37], %37 {strides = array<i32>} : memref<6x6x8xf32, #tpu.memory_space<vmem>>, vector<1x4x8xf32>,
    %38 = vector.shape_cast %7 : vector<16x8xf32> to vector<4x4x8xf32>
    %c1_38 = arith.constant 1 : index
    %c1_39 = arith.constant 1 : index
    %c0_40 = arith.constant 0 : index
    %39 = vector.load %arg10[%c1_38, %c1_39, %c0_40] : memref<6x6x8xf32, #tpu.memory_space<vmem>>, vector<4x4x8xf32>
    tpu.vector_store %arg10[%c1_38, %c1_39, %c0_40], %38 {strides = array<i32>} : memref<6x6x8xf32, #tpu.memory_space<vmem>>, vector<4x4x8xf32>,
    %c0_41 = arith.constant 0 : index
    %c0_42 = arith.constant 0 : index
    %c0_43 = arith.constant 0 : index
    %40 = vector.load %arg10[%c0_41, %c0_42, %c0_43] : memref<6x6x8xf32, #tpu.memory_space<vmem>>, vector<4x6x8xf32>
    %41 = vector.shape_cast %40 : vector<4x6x8xf32> to vector<24x8xf32>
    %c1_44 = arith.constant 1 : index
    %c0_45 = arith.constant 0 : index
    %c0_46 = arith.constant 0 : index
    %42 = vector.load %arg10[%c1_44, %c0_45, %c0_46] : memref<6x6x8xf32, #tpu.memory_space<vmem>>, vector<4x6x8xf32>
    %43 = vector.shape_cast %42 : vector<4x6x8xf32> to vector<24x8xf32>
    %c2 = arith.constant 2 : index
    %c0_47 = arith.constant 0 : index
    %c0_48 = arith.constant 0 : index
    %44 = vector.load %arg10[%c2, %c0_47, %c0_48] : memref<6x6x8xf32, #tpu.memory_space<vmem>>, vector<4x6x8xf32>
    %45 = vector.shape_cast %44 : vector<4x6x8xf32> to vector<24x8xf32>
    %46 = tpu.concatenate %41, %43, %45 in 1 : vector<24x8xf32>, vector<24x8xf32>, vector<24x8xf32> -> vector<24x24xf32>
    %c0_49 = arith.constant 0 : index
    %c0_50 = arith.constant 0 : index
    %c0_51 = arith.constant 0 : index
    %47 = vector.load %arg7[%c0_49, %c0_50, %c0_51] : memref<3x24x8xf32, #tpu.memory_space<vmem>>, vector<1x24x8xf32>
    %48 = vector.shape_cast %47 : vector<1x24x8xf32> to vector<24x8xf32>
    %cst_52 = arith.constant dense<0.000000e+00> : vector<24x8xf32>
    %49 = tpu.matmul %46, %48, %cst_52 {dimension_numbers = #tpu.dot_dimension_numbers<[1], [0], [0], [1], [0, 0, 1, 1], [], []>} : vector<24x24xf32>, vector<24x8xf32>, vector<24x8xf32> -> vector<24x8xf32>
    %50 = vector.shape_cast %49 : vector<24x8xf32> to vector<4x6x8xf32>
    %c1_53 = arith.constant 1 : index
    %c0_54 = arith.constant 0 : index
    %c0_55 = arith.constant 0 : index
    %51 = vector.load %arg7[%c1_53, %c0_54, %c0_55] : memref<3x24x8xf32, #tpu.memory_space<vmem>>, vector<1x24x8xf32>
    %52 = vector.shape_cast %51 : vector<1x24x8xf32> to vector<24x8xf32>
    %cst_56 = arith.constant dense<0.000000e+00> : vector<24x8xf32>
    %53 = tpu.matmul %46, %52, %cst_56 {dimension_numbers = #tpu.dot_dimension_numbers<[1], [0], [0], [1], [0, 0, 1, 1], [], []>} : vector<24x24xf32>, vector<24x8xf32>, vector<24x8xf32> -> vector<24x8xf32>
    %54 = vector.shape_cast %53 : vector<24x8xf32> to vector<4x6x8xf32>
    %c2_57 = arith.constant 2 : index
    %c0_58 = arith.constant 0 : index
    %c0_59 = arith.constant 0 : index
    %55 = vector.load %arg7[%c2_57, %c0_58, %c0_59] : memref<3x24x8xf32, #tpu.memory_space<vmem>>, vector<1x24x8xf32>
    %56 = vector.shape_cast %55 : vector<1x24x8xf32> to vector<24x8xf32>
    %cst_60 = arith.constant dense<0.000000e+00> : vector<24x8xf32>
    %57 = tpu.matmul %46, %56, %cst_60 {dimension_numbers = #tpu.dot_dimension_numbers<[1], [0], [0], [1], [0, 0, 1, 1], [], []>} : vector<24x24xf32>, vector<24x8xf32>, vector<24x8xf32> -> vector<24x8xf32>
    %58 = vector.shape_cast %57 : vector<24x8xf32> to vector<4x6x8xf32>
    %59 = vector.extract_strided_slice %50 {offsets = [0, 0, 0], sizes = [4, 4, 8], strides = [1, 1, 1]} : vector<4x6x8xf32> to vector<4x4x8xf32>
    %60 = vector.extract_strided_slice %54 {offsets = [0, 1, 0], sizes = [4, 4, 8], strides = [1, 1, 1]} : vector<4x6x8xf32> to vector<4x4x8xf32>
    %61 = arith.addf %59, %60 : vector<4x4x8xf32>
    %62 = vector.extract_strided_slice %58 {offsets = [0, 2, 0], sizes = [4, 4, 8], strides = [1, 1, 1]} : vector<4x6x8xf32> to vector<4x4x8xf32>
    %63 = arith.addf %61, %62 : vector<4x4x8xf32>
    %c0_61 = arith.constant 0 : index
    %c0_62 = arith.constant 0 : index
    %64 = vector.load %arg8[%c0_61, %c0_62] : memref<1x8xf32, #tpu.memory_space<vmem>>, vector<1x8xf32>
    %65 = vector.shape_cast %64 : vector<1x8xf32> to vector<1x1x8xf32>
    %66 = vector.broadcast %65 : vector<1x1x8xf32> to vector<4x4x8xf32>
    %67 = arith.addf %63, %66 : vector<4x4x8xf32>
    %c0_63 = arith.constant 0 : index
    %c0_64 = arith.constant 0 : index
    %c0_65 = arith.constant 0 : index
    %c0_66 = arith.constant 0 : index
    %68 = vector.load %arg9[%c0_63, %c0_64, %c0_65, %c0_66] : memref<1x4x4x8xf32, #tpu.memory_space<vmem>>, vector<1x4x4x8xf32>
    %69 = vector.shape_cast %68 : vector<1x4x4x8xf32> to vector<4x4x8xf32>
    %70 = vector.shape_cast %67 : vector<4x4x8xf32> to vector<1x4x4x8xf32>
    tpu.vector_store %arg9[%c0_63, %c0_64, %c0_65, %c0_66], %70 {strides = array<i32>} : memref<1x4x4x8xf32, #tpu.memory_space<vmem>>, vector<1x4x4x8xf32>,
    return
  }
  func.func @transform_0(%arg0: i32, %arg1: i32) -> (i32, i32, i32, i32) {
    %c0_i32 = arith.constant 0 : i32
    %c0_i32_0 = arith.constant 0 : i32
    %c0_i32_1 = arith.constant 0 : i32
    return %arg0, %arg1, %c0_i32, %c0_i32_0 : i32, i32, i32, i32
  }
  func.func @transform_1(%arg0: i32, %arg1: i32) -> (i32, i32, i32, i32) {
    %c4_i32 = arith.constant 4 : i32
    %0 = arith.muli %arg1, %c4_i32 : i32
    %c1_i32 = arith.constant 1 : i32
    %1 = arith.subi %0, %c1_i32 : i32
    %c0_i32 = arith.constant 0 : i32
    %2 = arith.maxsi %1, %c0_i32 : i32
    %c0_i32_0 = arith.constant 0 : i32
    %c0_i32_1 = arith.constant 0 : i32
    %c0_i32_2 = arith.constant 0 : i32
    return %arg0, %2, %c0_i32_0, %c0_i32_1 : i32, i32, i32, i32
  }
  func.func @transform_2(%arg0: i32, %arg1: i32) -> (i32, i32, i32, i32) {
    %c4_i32 = arith.constant 4 : i32
    %0 = arith.muli %arg1, %c4_i32 : i32
    %c4_i32_0 = arith.constant 4 : i32
    %1 = arith.addi %0, %c4_i32_0 : i32
    %c3_i32 = arith.constant 3 : i32
    %2 = arith.minsi %1, %c3_i32 : i32
    %c0_i32 = arith.constant 0 : i32
    %c0_i32_1 = arith.constant 0 : i32
    %c0_i32_2 = arith.constant 0 : i32
    return %arg0, %2, %c0_i32, %c0_i32_1 : i32, i32, i32, i32
  }
  func.func @transform_3(%arg0: i32, %arg1: i32) -> (i32, i32) {
    %c0_i32 = arith.constant 0 : i32
    %c0_i32_0 = arith.constant 0 : i32
    %c0_i32_1 = arith.constant 0 : i32
    return %c0_i32, %c0_i32_0 : i32, i32
  }
  func.func @transform_4(%arg0: i32, %arg1: i32) -> (i32, i32) {
    %c0_i32 = arith.constant 0 : i32
    %c0_i32_0 = arith.constant 0 : i32
    %c0_i32_1 = arith.constant 0 : i32
    return %c0_i32, %c0_i32_0 : i32, i32
  }
  func.func @transform_5(%arg0: i32, %arg1: i32) -> (i32, i32, i32) {
    %c0_i32 = arith.constant 0 : i32
    %c0_i32_0 = arith.constant 0 : i32
    %c0_i32_1 = arith.constant 0 : i32
    %c0_i32_2 = arith.constant 0 : i32
    return %c0_i32, %c0_i32_0, %c0_i32_1 : i32, i32, i32
  }
  func.func @transform_6(%arg0: i32, %arg1: i32) -> (i32, i32) {
    %c0_i32 = arith.constant 0 : i32
    %c0_i32_0 = arith.constant 0 : i32
    %c0_i32_1 = arith.constant 0 : i32
    return %c0_i32, %c0_i32_0 : i32, i32
  }
  func.func @transform_7(%arg0: i32, %arg1: i32) -> (i32, i32, i32, i32) {
    %c0_i32 = arith.constant 0 : i32
    %c0_i32_0 = arith.constant 0 : i32
    %c0_i32_1 = arith.constant 0 : i32
    return %arg0, %arg1, %c0_i32, %c0_i32_0 : i32, i32, i32, i32
  }
}

</mosaic_0001>

<bundles_post_ra>
// kernel: tpu_custom_call.1
= control target key start
LH: loop header
LB: loop body
LE: loop exit
PB: predicated region body
PF: predicated region fallthrough
CT: control target
= control target key end

     0   :  { %12 = vsyncpa [#allocation4], 0  ;;  %s2505_s0 = inlined_call_operand.vmem [shape: f32[2,4,4,8], index: 0, kind: input, shape index: {}]   ;;  %s2506_s1 = inlined_call_operand.vmem [shape: f32[2,4,4,8], index: 1, kind: input, shape index: {}]   ;;  %s2507_s2 = inlined_call_operand.vmem [shape: f32[2,4,4,8], index: 2, kind: input, shape index: {}]   ;;  %s2508_s3 = inlined_call_operand.vmem [shape: f32[8,8], index: 3, kind: input, shape index: {}]   ;;  %s2509_s4 = inlined_call_operand.vmem [shape: f32[1,8], index: 4, kind: input, shape index: {}]   ;;  %s2510_s5 = inlined_call_operand.vmem [shape: f32[3,24,8], index: 5, kind: input, shape index: {}]   ;;  %s2511_s6 = inlined_call_operand.vmem [shape: f32[1,8], index: 6, kind: input, shape index: {}]   ;;  %s2512_s7 = inlined_call_operand.hbm [shape: f32[2,4,4,8], index: 7, kind: output, shape index: {}]  }
   0x1   :  { %14 = vsyncpa [#allocation4 + $0x1], 0  ;;  %s2149_s24 = smov 0   ;;  %s2151_s25 = smov 0  }
   0x2   :  { %s2153_s26 = smov 0   ;;  %s2155_s27 = smov 0  }
   0x3   :  { %s2157_s28 = smov 0   ;;  %s2159_s29 = smov 0  }
   0x4 LB: > { %s1797_s30 = sadd.s32 4294967295, %s2098_s29   ;;  %s1798_s8 = sadd.s32 4294967294, %s2098_s29   ;;  %s2098_s29 = sphi %s2159_s29, %s20_s29   ;;  %s2094_s28 = sphi %s2157_s28, %s2521_s28   ;;  %s2090_s27 = sphi %s2155_s27, %s2520_s27   ;;  %s2086_s26 = sphi %s2153_s26, %s2519_s26   ;;  %s2082_s25 = sphi %s2151_s25, %s2518_s25   ;;  %s2078_s24 = sphi %s2149_s24, %s2517_s24  }
   0x5   : > { %s32_s9 = sadd.s32 1, %s2094_s28  ;;  %s225_s10 = sadd.s32 1, %s2086_s26 }
   0x6   : > { %p34_p0 = scmp.ge.s32.totalorder %s32_s9, 2  ;;  %p235_p1 = scmp.ne.s32.totalorder %s2086_s26, %s2082_s25 }
   0x7   : > { %p236_p2 = scmp.eq.s32.totalorder %s1797_s30, 1  ;;  %p241_p3 = scmp.ne.s32.totalorder %s2082_s25, %s2078_s24 }
   0x8   : > { %s2523_s9 = smov (%p34_p0, %s32_s9), 0  ;;  %p242_p5 = scmp.eq.s32.totalorder %s1798_s8, 1 }
   0x9   : > { %p2189_p4 = por %p236_p2, %p235_p1  ;;  %s220_s12 = ssub.s32 %s2094_s28, %s2523_s9 }
   0xa   : > { %p1801_p6 = scmp.ge.s32.totalorder %s2098_s29, 1  ;;  %p223_p7 = scmp.eq.s32.totalorder %s220_s12, 0 }
   0xb   : > { %p2196_p8 = por %p242_p5, %p241_p3  ;;  %p323_p9 = scmp.lt.s32.totalorder %s2098_s29, 3 }
   0xc   : > { %s2202_s14 = scalar_select %p223_p7, %s2086_s26, %s225_s10  }
   0xd   : > { %p324_p10 = pnand %p1801_p6, %p323_p9 }
   0xe   : > { %v430_v0 = vld [vmem:[%s2508_s3] sm:$0xff] (!%p324_p10)  ;;  %p384_p11 = scmp.lt.s32.totalorder (!%p324_p10), %s2090_s27, 1  ;;  %v2100_v1 = vmov (!%p324_p10), 0.0   ;;  %vm2101_vm0 = vmmov (!%p324_p10), 0   ;;  %vm444_vm1 = vcmask (!%p324_p10), 64512   ;;  %vm680_vm2 = vcmask (!%p324_p10), 62464  }
   0xf   : > { %327 = sbr.rel (%p324_p10) target bundleno = 642 (0x282), region = 48  ;;  %1875 = vmatprep.subr.mxu1 (!%p324_p10), %v2100_v1  ;;  %1877 = vmatprep.mubr.msk.f32.mxu1 (!%p324_p10), %vm2101_vm0, %v2100_v1  ;;  %681 = vst.msk [vmem:[#allocation2] sm:$0x3f] (!%p324_p10), %vm680_vm2, %v2100_v1  ;;  %682 = vst.msk [vmem:[#allocation2 + $0x8] sm:$0x3f] (!%p324_p10), %vm680_vm2, %v2100_v1  ;;  %v1100_v6 = vld [vmem:[%s2510_s5] sm:$0xff] (!%p324_p10)  ;;  %v714_v16 = vlaneseq (!%p324_p10) }
  0x10   : > { %1876 = vmatpush3.msra.mxu1 (!%p324_p10), %v430_v0  ;;  %1870 = vmatprep.subr.mxu0 (!%p324_p10), %v430_v0  ;;  %683 = vst.msk [vmem:[#allocation2 + $0x10] sm:$0x3f] (!%p324_p10), %vm680_vm2, %v2100_v1  ;;  %684 = vst.msk [vmem:[#allocation2 + $0x18] sm:$0x3f] (!%p324_p10), %vm680_vm2, %v2100_v1  ;;  %v1101_v7 = vld [vmem:[%s2510_s5 + $0x8] sm:$0xff] (!%p324_p10)  ;;  %v2102_v8 = vmov (!%p324_p10), 0.0|0.0  }
  0x11   : > { %1871 = vmatpush3.msra.mxu0 (!%p324_p10), %v430_v0  ;;  %685 = vst.msk [vmem:[#allocation2 + $0x20] sm:$0x3f] (!%p324_p10), %vm680_vm2, %v2100_v1  ;;  %686 = vst.msk [vmem:[#allocation2 + $0x28] sm:$0x3f] (!%p324_p10), %vm680_vm2, %v2100_v1  ;;  %1930 = vmatprep.subr.bf16.mxu1 (!%p324_p10), %v2102_v8  ;;  %v1931_v9 = vpack.c.bf16 (!%p324_p10), %v1101_v7, %v1100_v6  ;;  %v1809_v10 = vld [vmem:[%s2509_s4] ss:$0 sm:$0xff] (!%p324_p10) }
  0x12   : > { %1880 = vmatprep.subr.mxu0 (!%p324_p10), %v2100_v1  ;;  %vm687_vm3 = vcmask (!%p324_p10), 60416   ;;  %v2103_v14 = vmov (!%p324_p10), 1983009808   ;;  %v715_v24 = vshrl.u32 (!%p324_p10), %v714_v16, 7  ;;  %v1817_v31 = vld [vmem:[%s2510_s5 + $0x18] sm:$0xff] (!%p324_p10)  ;;  %v1818_v32 = vld [vmem:[%s2510_s5 + $0x20] sm:$0xff] (!%p324_p10) }
  0x13   : > { %v712_v15 = vunpack.c.l.s4 (!%p324_p10), %v2103_v14  ;;  %v1934_v35 = vpack.c.bf16 (!%p324_p10), %v1818_v32, %v1817_v31  ;;  %v1102_v40 = vld [vmem:[%s2510_s5 + $0x10] sm:$0xff] (!%p324_p10)  ;;  %v1819_v55 = vld [vmem:[%s2510_s5 + $0x28] sm:$0xff] (!%p324_p10)  ;;  %vm1096_vm4 = vcmask (!%p324_p10), 130048   ;;  %vm1103_vm5 = vcmask (!%p324_p10), 195584   ;;  %s380_s12 = sand.u32 (!%p324_p10), 1, %s2082_s25   ;;  %s2106_s23 = smov (!%p324_p10), [#allocation3]  }
  0x14   : > { %vm1535_vm6 = vcmask (!%p324_p10), 1040384   ;;  %vm1536_vm7 = vcmask (!%p324_p10), 1042434   ;;  %vm1538_vm9 = vcmask (!%p324_p10), 1044484   ;;  %vm1540_vm10 = vcmask (!%p324_p10), 1046534  }
  0x15   : > { %v713_v23 = vunpack.c.0.s8 (!%p324_p10), %v712_v15  ;;  %vm1537_vm8 = vmor (!%p324_p10), %vm1535_vm6, %vm1536_vm7 }
  0x16   : > { %s385_s17 = scalar_select %p384_p11, %s2090_s27, 1  ;;  %vm1539_vm11 = vmor %vm1537_vm8, %vm1538_vm9 }
  0x17   : > { %v2255_v30 = vsub.s32 %v713_v23, %v715_v24  ;;  %vm2374_vm12 = vmor %vm1539_vm11, %vm1540_vm10 }
  0x18   : > { %s1839_s18 = sshll.u32 %s385_s17, 4  ;;  %s2104_s17 = smov 8  }
  0x19   : > { %s404_s21 = scalar_lea.vmem %s2506_s1, %s1839_s18  ;;  %s391_s30 = scalar_lea.vmem %s2505_s0, %s1839_s18 }
  0x1a   : > { %v528_v2 = vld [vmem:[%s404_s21] sm:$0xf]  ;;  %s1842_s8 = sadd.s32 12, %s1839_s18  ;;  %v2007_v4 = vld [vmem:[%s391_s30 + $0x8] sm:$0xff]   ;;  %s2105_s18 = smov 16  }
  0x1b   : > { %1878 = vmatmul.mubr.msk.f32.vlgmr.msra.gmra.mrb[0].mxu1 %vm444_vm1, %v528_v2  ;;  %v2006_v3 = vld [vmem:[%s391_s30] sm:$0xff]   ;;  %s420_s15 = scalar_lea.vmem %s2507_s2, %s1842_s8  ;;  %s2024_s30 = sshll.u32 %s2106_s23, 4  ;;  %s2025_s30 = int_to_ptr.vmem [resolvable:$false] %s2024_s30 }
  0x1c   : > { %1891 = vmatprep.mubr.msk.f32.mxu1 %vm2101_vm0, %v2100_v1  ;;  %1872 = vmatprep.mubr.msk.f32.mxu0 %vm444_vm1, %v2006_v3  ;;  %v604_v5 = vld [vmem:[%s420_s15] sm:$0xf]  ;;  %s1802_s15 = sshll.u32 %s380_s12, 4  ;;  %s2026_s8 = scalar_lea.vmem %s2025_s30, 512 }
  0x1d   : > { %1873 = vmatmul.mubr.msk.f32.vlgmr.msra.gmra.mrb[0].mxu0 %vm444_vm1, %v2007_v4  ;;  %1932 = vmatpush3.bf16.msra.mxu1 %v1931_v9  ;;  %s382_s16 = scalar_lea.vmem [#allocation3], %s1802_s15 }
  0x1e   : > { %1881 = vmatpush3.msra.mxu0 %v430_v0  ;;  %1882 = vmatprep.mubr.msk.f32.mxu0 %vm2101_vm0, %v2100_v1 }
  0x1f   : > { %1933 = vmatprep.subr.bf16.mxu0 %v2102_v8  ;;  %1889 = vmatprep.subr.mxu1 %v2100_v1 }
  0x21   : > { %1883 = vmatmul.mubr.msk.f32.vlgmr.msra.gmra.mrb[2].mxu0 %vm444_vm1, %v604_v5  ;;  %1890 = vmatpush3.msra.mxu1 %v1102_v40 }
  0x22   : > { %1906 = vmatprep.mubr.msk.f32.mxu0 %vm2101_vm0, %v2100_v1  ;;  %1935 = vmatpush3.bf16.msra.mxu0 %v1934_v35 }
  0x23   : > { %1904 = vmatprep.subr.mxu0 %v2100_v1  ;;  %1939 = vmatprep.subr.bf16.mxu1 %v2102_v8 }
  0x26   : > { %1905 = vmatpush3.msra.mxu0 %v1819_v55 }
  0x27   : > { %1936 = vmatprep.subr.bf16.mxu0 %v2102_v8 }
  0xee   : > { %v598_v11 = vpop.f32.mrb[0].mxu1 }
  0xef   : > { %v599_v12 = vadd.f32 %v1809_v10, %v598_v11  ;;  %v1879_v13 = vpop.f32.mrb[1].mxu1 }
  0xf0   : > { %v1874_v18 = vpop.f32.mrb[0].mxu0 }
  0xf1   : > { %v603_v17 = vmul.f32 0.0, %v599_v12  ;;  %v521_v19 = vadd.f32 %v1874_v18, %v1809_v10  ;;  %v515_v20 = vpop.f32.mrb[1].mxu0 }
  0xf2   : > { %v516_v21 = vadd.f32 %v1809_v10, %v515_v20 }
  0xf3   : > { %688 = vst.msk [vmem:[#allocation2 + $0x1] sm:$0xf] %vm687_vm3, %v603_v17  ;;  %v694_v22 = vcombine.high %v521_v19, %v521_v19  ;;  %700 = vst.msk [vmem:[#allocation2 + $0x19] sm:$0xf] %vm687_vm3, %v521_v19 }
  0xf4   : > { %v693_v25 = vcombine.high %v516_v21, %v516_v21  ;;  %698 = vst.msk [vmem:[#allocation2 + $0x9] sm:$0xf] %vm687_vm3, %v516_v21  ;;  %v674_v26 = vpop.f32.mrb[2].mxu0 }
  0xf5   : > { %701 = vst.msk [vmem:[#allocation2 + $0x21] sm:$0xf] %vm687_vm3, %v694_v22  ;;  %v675_v27 = vadd.f32 %v1809_v10, %v674_v26  ;;  %v1884_v28 = vpop.f32.mrb[3].mxu0 }
  0xf6   : > { %699 = vst.msk [vmem:[#allocation2 + $0x11] sm:$0xf] %vm687_vm3, %v693_v25 }
  0xf7   : > { %v679_v29 = vmul.f32 0.0, %v675_v27 }
  0xf9   : > { %690 = vst.msk [vmem:[#allocation2 + $0x29] sm:$0xf] %vm687_vm3, %v679_v29 }
  0xfa   : > { %v776_v33 = vld [vmem:[#allocation2 + $0x18] sm:$0x3f] }
  0xfb   : > { %v848_v34 = vld [vmem:[#allocation2 + $0x18] sm:$0x3f]  ;;  %v774_v36 = vld [vmem:[#allocation2 + $0x8] sm:$0x3f]  ;;  %v821_v37 = vrot.slane %v776_v33, %v2255_v30  ;;  %v814_v43 = vcombine.high %v776_v33, %v776_v33 }
  0xfc   : > { %v878_v38 = vrot.slane %v848_v34, %v2255_v30  ;;  %v871_v39 = vcombine.high %v848_v34, %v848_v34  ;;  %v782_v41 = vcombine.high %v774_v36, %v774_v36  ;;  %v789_v42 = vrot.slane %v774_v36, %v2255_v30  ;;  %v849_v44 = vld [vmem:[#allocation2 + $0x20] sm:$0x3f] }
  0xfd   : > { %v775_v45 = vld [vmem:[#allocation2 + $0x10] sm:$0x3f]  ;;  %v829_v46 = vcombine.high %v821_v37, %v821_v37  ;;  %v894_v50 = vrot.slane %v849_v44, %v2255_v30  ;;  %v777_v3 = vld [vmem:[#allocation2 + $0x20] sm:$0x3f]  ;;  %v828_v12 = vrot.slane %v814_v43, %v2255_v30  ;;  %v887_v20 = vcombine.high %v849_v44, %v849_v44 }
  0xfe   : > { %v847_v47 = vld [vmem:[#allocation2 + $0x10] sm:$0x3f]  ;;  %v885_v48 = vrot.slane %v871_v39, %v2255_v30  ;;  %v886_v49 = vcombine.high %v878_v38, %v878_v38  ;;  %v796_v51 = vrot.slane %v782_v41, %v2255_v30  ;;  %v797_v52 = vcombine.high %v789_v42, %v789_v42  ;;  %v702_v44 = vld [vmem:[#allocation2] sm:$0x3f] }
  0xff   : > { %v805_v53 = vrot.slane %v775_v45, %v2255_v30  ;;  %v798_v54 = vcombine.high %v775_v45, %v775_v45  ;;  %v991_v56 = vcombine.low %v821_v37, %v829_v46  ;;  %v855_v57 = vcombine.high %v847_v47, %v847_v47 }
 0x100   : > { %v862_v58 = vrot.slane %v847_v47, %v2255_v30  ;;  %v902_v59 = vcombine.high %v894_v50, %v894_v50  ;;  %v973_v60 = vcombine.low %v789_v42, %v797_v52  ;;  %v1050_v11 = vcombine.low %v886_v49, %v885_v48  ;;  %v850_v13 = vld [vmem:[#allocation2 + $0x28] sm:$0x3f]  ;;  %v704_v48 = vld [vmem:[#allocation2 + $0x10] sm:$0x3f] }
 0x101   : > { %v974_v61 = vcombine.low %v796_v51, %v805_v53  ;;  %v812_v62 = vrot.slane %v798_v54, %v2255_v30  ;;  %v813_v63 = vcombine.high %v805_v53, %v805_v53  ;;  %v869_v0 = vrot.slane %v855_v57, %v2255_v30  ;;  %v703_v47 = vld [vmem:[#allocation2 + $0x8] sm:$0x3f]  ;;  %v705_v53 = vld [vmem:[#allocation2 + $0x18] sm:$0x3f] }
 0x102   : > { %v870_v2 = vcombine.high %v862_v58, %v862_v58  ;;  %v981_v4 = vrot.slane %v973_v60, %v2255_v30  ;;  %v1051_v7 = vcombine.low %v894_v50, %v902_v59  ;;  %v1005_v16 = vrot.slane %v991_v56, %v2255_v30 }
 0x103   : > { %v988_v5 = vrot.slane %v974_v61, %v2255_v30  ;;  %v990_v6 = vcombine.low %v813_v63, %v812_v62  ;;  %v1034_v10 = vcombine.low %v869_v0, %v878_v38  ;;  %v830_v17 = vcombine.high %v777_v3, %v777_v3 }
 0x104   : > { %v1033_v9 = vcombine.low %v862_v58, %v870_v2  ;;  %v837_v19 = vrot.slane %v777_v3, %v2255_v30  ;;  %v1065_v22 = vrot.slane %v1051_v7, %v2255_v30  ;;  %v903_v24 = vcombine.high %v850_v13, %v850_v13 }
 0x105   : > { %v989_v14 = vcombine.low %v981_v4, %v988_v5  ;;  %v998_v15 = vrot.slane %v990_v6, %v2255_v30  ;;  %v1048_v18 = vrot.slane %v1034_v10, %v2255_v30  ;;  %v844_v23 = vrot.slane %v830_v17, %v2255_v30  ;;  %v1824_v10 = vld [vmem:[%s2510_s5 + $0x38] sm:$0xff] }
 0x106   : > { %v1041_v8 = vrot.slane %v1033_v9, %v2255_v30  ;;  %v1058_v25 = vrot.slane %v1050_v11, %v2255_v30  ;;  %v845_v26 = vcombine.high %v837_v19, %v837_v19  ;;  %v1007_v27 = vcombine.low %v828_v12, %v837_v19  ;;  %v1823_v9 = vld [vmem:[%s2510_s5 + $0x30] sm:$0xff] }
 0x107   : > { %1024 = vrot.lane.b32.xlu0 %v989_v14, %s2104_s17  ;;  %v1006_v21 = vcombine.low %v998_v15, %v1005_v16  ;;  %v901_v29 = vrot.slane %v887_v20, %v2255_v30  ;;  %v910_v31 = vrot.slane %v850_v13, %v2255_v30  ;;  %v917_v32 = vrot.slane %v903_v24, %v2255_v30 }
 0x108   : > { %v1049_v28 = vcombine.low %v1041_v8, %v1048_v18  ;;  %v1008_v33 = vcombine.low %v845_v26, %v844_v23  ;;  %v1066_v34 = vcombine.low %v1058_v25, %v1065_v22  ;;  %v1015_v37 = vrot.slane %v1007_v27, %v2255_v30  ;;  %v1825_v26 = vld [vmem:[%s2510_s5 + $0x40] sm:$0xff] }
 0x109   : > { %1026 = vrot.lane.b32.xlu1 %v1006_v21, %s2104_s17  ;;  %v918_v35 = vcombine.high %v910_v31, %v910_v31  ;;  %v1067_v36 = vcombine.low %v901_v29, %v910_v31  ;;  %v717_v45 = vrot.slane %v702_v44, %v2255_v30  ;;  %v710_v46 = vcombine.high %v702_v44, %v702_v44 }
 0x10a   : > { %v1022_v38 = vrot.slane %v1008_v33, %v2255_v30  ;;  %v733_v51 = vrot.slane %v703_v47, %v2255_v30  ;;  %v749_v52 = vrot.slane %v704_v48, %v2255_v30  ;;  %v726_v54 = vcombine.high %v703_v47, %v703_v47  ;;  %v1833_v33 = vld [vmem:[%s2511_s6] ss:$0 sm:$0xff] }
 0x10b   : > { %1084 = vrot.lane.b32.xlu0 %v1049_v28, %s2105_s18  ;;  %v1068_v39 = vcombine.low %v918_v35, %v917_v32  ;;  %v1075_v41 = vrot.slane %v1067_v36, %v2255_v30  ;;  %v725_v49 = vcombine.high %v717_v45, %v717_v45  ;;  %v724_v50 = vrot.slane %v710_v46, %v2255_v30 }
 0x10c   : > { %v1023_v40 = vcombine.low %v1015_v37, %v1022_v38  ;;  %v742_v55 = vcombine.high %v704_v48, %v704_v48  ;;  %v757_v58 = vcombine.high %v749_v52, %v749_v52  ;;  %v758_v59 = vcombine.high %v705_v53, %v705_v53 }
 0x10d   : > { %1086 = vrot.lane.b32.xlu1 %v1066_v34, %s2105_s18  ;;  %v1082_v42 = vrot.slane %v1068_v39, %v2255_v30  ;;  %v919_v56 = vcombine.low %v717_v45, %v725_v49  ;;  %v920_v57 = vcombine.low %v724_v50, %v733_v51  ;;  %v765_v60 = vrot.slane %v705_v53, %v2255_v30 }
 0x10e   : > { %v740_v61 = vrot.slane %v726_v54, %v2255_v30  ;;  %v741_v62 = vcombine.high %v733_v51, %v733_v51  ;;  %v756_v63 = vrot.slane %v742_v55, %v2255_v30  ;;  %v937_v3 = vcombine.low %v749_v52, %v757_v58 }
 0x10f   : > { %1028 = vrot.lane.b32.xlu0 %v1023_v40, %s2104_s17  ;;  %v1083_v43 = vcombine.low %v1075_v41, %v1082_v42  ;;  %v927_v0 = vrot.slane %v919_v56, %v2255_v30  ;;  %v934_v2 = vrot.slane %v920_v57, %v2255_v30  ;;  %v772_v4 = vrot.slane %v758_v59, %v2255_v30  ;;  %s1843_s17 = sshll.u32 %s2090_s27, 8  ;;  %s2459_s27 = scalar_lea.sflag [#allocation4], %s380_s12 }
 0x110   : > { %v773_v5 = vcombine.high %v765_v60, %v765_v60  ;;  %v936_v7 = vcombine.low %v741_v62, %v740_v61  ;;  %v953_v11 = vcombine.low %v756_v63, %v765_v60  ;;  %v951_v14 = vrot.slane %v937_v3, %v2255_v30  ;;  %s2450_s21 = scalar_lea.hbm %s2512_s7, %s1843_s17 }
 0x111   : > { %1088 = vrot.lane.b32.xlu1 %v1083_v43, %s2105_s18  ;;  %v935_v12 = vcombine.low %v927_v0, %v934_v2  ;;  %v1937_v16 = vpack.c.bf16 %v1824_v10, %v1823_v9  ;;  %v2359_v36 = vrot.slane %v1833_v33, %v2255_v30  ;;  %s1682_s18 = sshll.u32 %s382_s16, 4  ;;  %s2452_s18 = int_to_ptr.vmem [resolvable:$true] %s1682_s18 }
 0x112   : > { %v954_v15 = vcombine.low %v773_v5, %v772_v4  ;;  %v944_v8 = vrot.slane %v936_v7, %v2255_v30  ;;  %v961_v19 = vrot.slane %v953_v11, %v2255_v30  ;;  %s2020_s22 = scalar_lea.vmem %s2452_s18, 256  ;;  %p2027_p1 = scmp.lt.s32.totalorder %s2452_s18, %s2025_s30 }
 0x113   : > { %v2380_v49 = vcombine.high %v2359_v36, %v2359_v36  ;;  %p2021_p12 = scmp.ne.s32.totalorder %s2452_s18, %s2020_s22  ;;  %p2028_p2 = scmp.lt.s32.totalorder %s2026_s8, %s2020_s22 }
 0x114   : > { %v952_v21 = vcombine.low %v944_v8, %v951_v14  ;;  %v968_v23 = vrot.slane %v954_v15, %v2255_v30 }
 0x115   : > { %p2022_p13 = pnand %p2021_p12, %p2189_p4  ;;  %p2029_p3 = por %p2028_p2, %p2027_p1 }
 0x116   : > { %v969_v25 = vcombine.low %v961_v19, %v968_v23 }
 0x117   : > { %p2023_p0 = pneg %p2022_p13 }
 0x119   : > { %p2030_p5 = pnand %p2029_p3, %p2023_p0 }
 0x179   : > { %v1025_v6 = vpop.permute.xlu0 %1024 }
 0x17a   : > { %v1093_v17 = vsel %vm444_vm1, %v935_v12, %v1025_v6 }
 0x17b   : > { %v1027_v13 = vpop.permute.xlu1 %1026 }
 0x17c   : > { %v1094_v24 = vsel %vm444_vm1, %v952_v21, %v1027_v13 }
 0x17d   : > { %v1085_v18 = vpop.permute.xlu0 %1084 }
 0x17e   : > { %v1097_v20 = vsel %vm1096_vm4, %v1093_v17, %v1085_v18 }
 0x17f   : > { %1892 = vmatmul.mubr.msk.f32.vlgmr.msra.gmra.mrb[2].mxu1 %vm1103_vm5, %v1097_v20  ;;  %1907 = vmatmul.mubr.msk.f32.vlgmr.msra.gmra.mrb[4].mxu0 %vm1103_vm5, %v1097_v20  ;;  %v1087_v22 = vpop.permute.xlu1 %1086 }
 0x180   : > { %1941 = vmatpush3.bf16.msra.mxu1 %v1937_v16  ;;  %1894 = vmatprep.mubr.msk.f32.mxu1 %vm2101_vm0, %v2100_v1  ;;  %v1098_v27 = vsel %vm1096_vm4, %v1094_v24, %v1087_v22 }
 0x181   : > { %1909 = vmatprep.mubr.msk.f32.mxu0 %vm2101_vm0, %v2100_v1  ;;  %1940 = vmatprep.subr.mxu1 %v2100_v1  ;;  %v1029_v28 = vpop.permute.xlu0 %1028 }
 0x182   : > { %1938 = vmatpush3.bf16.msra.mxu0 %v1937_v16  ;;  %v1095_v29 = vsel %vm444_vm1, %v969_v25, %v1029_v28 }
 0x183   : > { %1895 = vmatmul.mubr.msk.f32.gmra.mrb[4].mxu1 %vm1103_vm5, %v1098_v27  ;;  %1910 = vmatmul.mubr.msk.f32.gmra.mrb[6].mxu0 %vm1103_vm5, %v1098_v27  ;;  %v1089_v31 = vpop.permute.xlu1 %1088 }
 0x184   : > { %1942 = vmatpush3.msra.mxu1 %v1825_v26  ;;  %1897 = vmatprep.mubr.msk.f32.mxu1 %vm2101_vm0, %v2100_v1  ;;  %v1099_v32 = vsel %vm1096_vm4, %v1095_v29, %v1089_v31 }
 0x185   : > { %1912 = vmatprep.mubr.msk.f32.mxu0 %vm2101_vm0, %v2100_v1  ;;  %1919 = vmatprep.subr.mxu0 %v2100_v1 }
 0x186   : > { %1920 = vmatpush3.msra.mxu0 %v1825_v26 }
 0x187   : > { %1898 = vmatmul.mubr.msk.f32.gmra.mrb[6].mxu1 %vm1103_vm5, %v1099_v32  ;;  %1913 = vmatmul.mubr.msk.f32.gmra.mrb[8].mxu0 %vm1103_vm5, %v1099_v32 }
 0x188   : > { %1921 = vmatprep.mubr.msk.f32.mxu0 %vm2101_vm0, %v2100_v1  ;;  %1924 = vmatprep.mubr.msk.f32.mxu1 %vm2101_vm0, %v2100_v1 }
 0x18b   : > { %1922 = vmatmul.mubr.msk.f32.vlgmr.msra.gmra.mrb[10].mxu0 %vm1103_vm5, %v1097_v20  ;;  %1925 = vmatmul.mubr.msk.f32.vlgmr.msra.gmra.mrb[8].mxu1 %vm1103_vm5, %v1098_v27 }
 0x18c   : > { %1927 = vmatprep.mubr.msk.f32.mxu1 %vm2101_vm0, %v2100_v1 }
 0x18f   : > { %1928 = vmatmul.mubr.msk.f32.gmra.mrb[10].mxu1 %vm1103_vm5, %v1099_v32 }
 0x252   : > { %v1179_v34 = vpop.f32.mrb[2].mxu1  ;;  %v1323_v35 = vpop.f32.mrb[4].mxu0 }
 0x253   : > { %v1196_v37 = vcombine.high %v1179_v34, %v1179_v34  ;;  %v2362_v38 = vrot.slane %v1179_v34, %v2255_v30  ;;  %v1340_v1 = vcombine.high %v1323_v35, %v1323_v35  ;;  %v1347_v39 = vrot.slane %v1323_v35, %v2255_v30  ;;  %v1893_v40 = vpop.f32.mrb[3].mxu1  ;;  %v1908_v41 = vpop.f32.mrb[5].mxu0 }
 0x255   : > { %v2366_v42 = vrot.slane %v1196_v37, %v2255_v30  ;;  %v1354_v43 = vrot.slane %v1340_v1, %v2255_v30  ;;  %v1355_v44 = vcombine.high %v1347_v39, %v1347_v39  ;;  %v1211_v45 = vcombine.high %v2362_v38, %v2362_v38 }
 0x256   : > { %v2371_v46 = vpop.f32.mrb[4].mxu1  ;;  %v1328_v47 = vpop.f32.mrb[6].mxu0  ;;  %v1829_v52 = vrot.slane %v1347_v39, 9 }
 0x257   : > { %v1212_v50 = vcombine.high %v2366_v42, %v2366_v42  ;;  %v1356_v51 = vcombine.high %v1354_v43, %v1354_v43  ;;  %v1544_v53 = vrot.slane %v1355_v44, 7  ;;  %v1896_v54 = vpop.f32.mrb[5].mxu1  ;;  %v1911_v55 = vpop.f32.mrb[7].mxu0  ;;  %v1547_v56 = vrot.slane %v1354_v43, 7 }
 0x258   : > { %v1213_v57 = vcombine.high %v2371_v46, %v2371_v46  ;;  %v1357_v58 = vcombine.high %v1328_v47, %v1328_v47  ;;  %v1364_v59 = vrot.slane %v1328_v47, %v2255_v30  ;;  %v1220_v62 = vrot.slane %v2371_v46, %v2255_v30 }
 0x259   : > { %v1546_v60 = vrot.slane %v1544_v53, 2  ;;  %v1830_v61 = vrot.slane %v1356_v51, 9  ;;  %v1545_v63 = vsel %vm2374_vm12, %v1829_v52, %v1544_v53 }
 0x25a   : > { %v2392_v0 = vrot.slane %v1213_v57, %v2255_v30  ;;  %v1371_v2 = vrot.slane %v1357_v58, %v2255_v30  ;;  %v1372_v3 = vcombine.high %v1364_v59, %v1364_v59  ;;  %v1551_v4 = vrot.slane %v1364_v59, 7  ;;  %v1189_v5 = vpop.f32.mrb[6].mxu1  ;;  %v1333_v6 = vpop.f32.mrb[8].mxu0 }
 0x25b   : > { %v1229_v7 = vcombine.high %v1189_v5, %v1189_v5  ;;  %v2396_v9 = vrot.slane %v1189_v5, %v2255_v30  ;;  %v1374_v10 = vcombine.high %v1333_v6, %v1333_v6  ;;  %v1381_v11 = vrot.slane %v1333_v6, %v2255_v30  ;;  %v1899_v12 = vpop.f32.mrb[7].mxu1  ;;  %v1914_v13 = vpop.f32.mrb[9].mxu0 }
 0x25c   : > { %v1228_v14 = vcombine.high %v2392_v0, %v2392_v0  ;;  %v1373_v15 = vcombine.high %v1371_v2, %v1371_v2  ;;  %v1553_v16 = vrot.slane %v1551_v4, 2  ;;  %v1554_v17 = vrot.slane %v1372_v3, 7 }
 0x25d   : > { %v1831_v8 = vrot.slane %v1371_v2, 9  ;;  %v1243_v18 = vrot.slane %v1229_v7, %v2255_v30  ;;  %v1244_v19 = vcombine.high %v2396_v9, %v2396_v9  ;;  %v1388_v20 = vrot.slane %v1374_v10, %v2255_v30 }
 0x25e   : > { %v1558_v21 = vrot.slane %v1373_v15, 7  ;;  %v1389_v22 = vcombine.high %v1381_v11, %v1381_v11  ;;  %v1561_v23 = vrot.slane %v1381_v11, 7  ;;  %v1461_v24 = vpop.f32.mrb[10].mxu0  ;;  %v1548_v25 = vsel %vm2374_vm12, %v1546_v60, %v1547_v56  ;;  %v1466_v26 = vpop.f32.mrb[8].mxu1 }
 0x25f   : > { %v1390_v27 = vcombine.high %v1388_v20, %v1388_v20  ;;  %v1565_v28 = vrot.slane %v1388_v20, 7  ;;  %v1478_v29 = vcombine.high %v1461_v24, %v1461_v24  ;;  %v1485_v31 = vrot.slane %v1461_v24, %v2255_v30  ;;  %v1923_v32 = vpop.f32.mrb[11].mxu0  ;;  %v1926_v33 = vpop.f32.mrb[9].mxu1 }
 0x260   : > { %v1560_v34 = vrot.slane %v1558_v21, 2  ;;  %v1832_v35 = vrot.slane %v1389_v22, 9  ;;  %v1578_v37 = vadd.f32 %v1545_v63, %v2362_v38  ;;  %v1579_v1 = vadd.f32 %v1548_v25, %v1211_v45 }
 0x261   : > { %v1567_v39 = vrot.slane %v1565_v28, 2  ;;  %v1568_v40 = vrot.slane %v1390_v27, 7  ;;  %v1492_v41 = vrot.slane %v1478_v29, %v2255_v30  ;;  %v1493_v43 = vcombine.high %v1485_v31, %v1485_v31 }
 0x262   : > { %v1494_v44 = vcombine.high %v1466_v26, %v1466_v26  ;;  %v1501_v46 = vrot.slane %v1466_v26, %v2255_v30  ;;  %v1552_v47 = vsel %vm2374_vm12, %v1830_v61, %v1551_v4  ;;  %v1555_v51 = vsel %vm2374_vm12, %v1553_v16, %v1554_v17  ;;  %v1471_v52 = vpop.f32.mrb[10].mxu1 }
 0x263   : > { %v1586_v53 = vadd.f32 %v1578_v37, %v1493_v43  ;;  %v1587_v38 = vadd.f32 %v1579_v1, %v1492_v41  ;;  %v1559_v45 = vsel %vm2374_vm12, %v1831_v8, %v1558_v21  ;;  %v1580_v54 = vadd.f32 %v1552_v47, %v1212_v50  ;;  %v1929_v55 = vpop.f32.mrb[11].mxu1 }
 0x264   : > { %v1508_v56 = vrot.slane %v1494_v44, %v2255_v30  ;;  %v1509_v57 = vcombine.high %v1501_v46, %v1501_v46  ;;  %v1581_v58 = vadd.f32 %v1555_v51, %v1220_v62  ;;  %v1582_v59 = vadd.f32 %v1559_v45, %v2392_v0 }
 0x265   : > { %v1610_v60 = vadd.f32 %v2359_v36, %v1586_v53  ;;  %v1611_v61 = vadd.f32 %v2380_v49, %v1587_v38  ;;  %v1588_v63 = vadd.f32 %v1580_v54, %v1501_v46  ;;  %v1511_v2 = vcombine.high %v1471_v52, %v1471_v52 }
 0x266   : > { %v1510_v3 = vcombine.high %v1508_v56, %v1508_v56  ;;  %v1589_v4 = vadd.f32 %v1581_v58, %v1509_v57  ;;  %v1518_v42 = vrot.slane %v1471_v52, %v2255_v30  ;;  %v1562_v50 = vsel %vm2374_vm12, %v1560_v34, %v1561_v23 }
 0x267   : > { %v1626_v5 = vcombine.low %v1610_v60, %v1611_v61  ;;  %v1612_v62 = vadd.f32 %v2359_v36, %v1588_v63  ;;  %v1525_v0 = vrot.slane %v1511_v2, %v2255_v30  ;;  %v1566_v6 = vsel %vm2374_vm12, %v1832_v35, %v1565_v28 }
 0x268   : > { %v1590_v7 = vadd.f32 %v1582_v59, %v1510_v3  ;;  %v1613_v9 = vadd.f32 %v2380_v49, %v1589_v4  ;;  %v1569_v10 = vsel %vm2374_vm12, %v1567_v39, %v1568_v40  ;;  %v1583_v11 = vadd.f32 %v1562_v50, %v1228_v14 }
 0x269   : > { %v1633_v12 = vrot.slane %v1626_v5, %v2255_v30  ;;  %v1526_v13 = vcombine.high %v1525_v0, %v1525_v0  ;;  %v1584_v15 = vadd.f32 %v1566_v6, %v1244_v19  ;;  %v1585_v16 = vadd.f32 %v1569_v10, %v1243_v18 }
 0x26a   : > { %v1614_v17 = vadd.f32 %v2359_v36, %v1590_v7  ;;  %v1634_v8 = vcombine.low %v1612_v62, %v1613_v9  ;;  %v1591_v20 = vadd.f32 %v1583_v11, %v1518_v42 }
 0x26b   : > { %1662 = vst.msk [vmem:[%s382_s16] sm:$0xf] %vm687_vm3, %v1633_v12  ;;  %v1592_v21 = vadd.f32 %v1584_v15, %v1525_v0  ;;  %v1593_v22 = vadd.f32 %v1585_v16, %v1526_v13 }
 0x26c   : > { %v1641_v48 = vrot.slane %v1634_v8, %v2255_v30  ;;  %v1615_v14 = vadd.f32 %v2380_v49, %v1591_v20 }
 0x26d   : > { %v1616_v23 = vadd.f32 %v2359_v36, %v1592_v21  ;;  %v1617_v19 = vadd.f32 %v2380_v49, %v1593_v22 }
 0x26e   : > { %1663 = vst.msk [vmem:[%s382_s16 + $0x4] sm:$0xf] %vm687_vm3, %v1641_v48  ;;  %v1642_v18 = vcombine.low %v1614_v17, %v1615_v14 }
 0x26f   : > { %v1650_v24 = vcombine.low %v1616_v23, %v1617_v19 }
 0x270   : > { %v1649_v25 = vrot.slane %v1642_v18, %v2255_v30 }
 0x271   : > { %v1657_v36 = vrot.slane %v1650_v24, %v2255_v30 }
 0x272   : > { %1664 = vst.msk [vmem:[%s382_s16 + $0x8] sm:$0xf] %vm687_vm3, %v1649_v25 }
 0x273   : > { %1665 = vst.msk [vmem:[%s382_s16 + $0xc] sm:$0xf] %vm687_vm3, %v1657_v36 }
 0x274   : > { %2033 = shalt.err (!%p2030_p5)
}
 0x275   : > { %s2034_s10 = scalar_lea.hbm %s2450_s21, 256  ;;  %s2038_s16 = scalar_lea.hbm %s2512_s7, 512 }
 0x276   : > { %p2035_p6 = scmp.ne.s32.totalorder %s2450_s21, %s2034_s10  ;;  %p2039_p10 = scmp.lt.u32.totalorder %s2450_s21, %s2512_s7 }
 0x277   : > { %p2040_p11 = scmp.lt.u32.totalorder %s2038_s16, %s2034_s10  ;;  %p2042_p13 = scmp.lt.u32.totalorder %s2034_s10, %s2450_s21 }
 0x278   : > { %p2036_p7 = pnand %p2035_p6, %p2189_p4 }
 0x279   : > { %p2041_p12 = por %p2040_p11, %p2039_p10 }
 0x27a   : > { %p2037_p9 = pneg %p2036_p7 }
 0x27b   : > { %p2043_p0 = por %p2042_p13, %p2041_p12 }
 0x27d   : > { %p2044_p1 = pnand %p2043_p0, %p2037_p9 }
 0x27f   : > { %2047 = shalt.err (!%p2044_p1)
}
 0x280   : > { %s2107_s20 = smov 64   ;;  %s2108_s22 = smov 4  }
 0x281   : > { %1943 = dma.vmem_to_hbm [thread:$0]  (%p2189_p4), %s2452_s18, 256, %s2450_s21, %s2459_s27, %s2107_s20, %s2107_s20, %s2108_s22  }
 0x282 PF: > { %p1949_p2 = scmp.ge.s32.totalorder %s2098_s29, 2  ;;  %s1697_s23 = sand.u32 1, %s2078_s24  }
 0x283   : > { %s1698_s30 = scalar_lea.sflag [#allocation4], %s1697_s23 }
 0x284   : > { %p1946_p3 = pnand %p1949_p2, %p2196_p8 }
 0x286   : > { %2073 = dma.done.wait (!%p1946_p3), %s1698_s30, 256  }
 0x287   : > { %2075 = vsyncadd (!%p1946_p3), %s1698_s30, 4294967040  ;;  %s20_s29 = sadd.s32 1, %s2098_s29   ;;  %s2517_s24 = smov %s2082_s25 }
 0x288   : > { %p17_p5 = scmp.ge.s32.totalorder %s20_s29, 4   ;;  %s2518_s25 = smov %s2086_s26 }
 0x289   : > { %s2519_s26 = smov %s2202_s14  ;;  %s2520_s27 = smov %s2094_s28 }
 0x28a   : > { %s2521_s28 = smov %s2523_s9  ;;  %19 = sbr.rel (!%p17_p5) target bundleno = 4 (0x4), region = 94 }
 0x291   :  { %1703 = vsyncpa [#allocation4], 1 }
 0x292   :  { %1705 = vsyncpa [#allocation4 + $0x1], 1 }

</bundles_post_ra>
